<compile_context>
chip_gen: v6e
topology: v6e:2x2x1
jax: 0.10.0
libtpu: 0.0.40
codegen_flags: <defaults>
</compile_context>

<pallas_src>
import functools

import jax
import jax.numpy as jnp
from jax.experimental import pallas as pl
from jax.experimental.pallas import tpu as pltpu


def _round_up(x: int, m: int) -> int:
    return (x + m - 1) // m * m


def _cdiv(a: int, b: int) -> int:
    return (a + b - 1) // b


def _sublane(dtype) -> int:
    """Native sublane tile for a dtype: 8 (f32), 16 (bf16), 32 (int8/fp8)."""
    return max(8, 32 // jnp.dtype(dtype).itemsize)


def _vmem_physical_bytes() -> int:
    """Physical VMEM per TensorCore; conservative fallback if query fails."""
    try:
        info = pltpu.get_tpu_info()
        v = getattr(info, "vmem_capacity_bytes", None)
        if v:
            return int(v)
    except Exception:
        pass
    return 128 * 1024 * 1024  # v5e / v6e


# ----------------------------------------------------------------------------
# Kernels
# ----------------------------------------------------------------------------
def _linear_kernel_f32out(x_ref, w_ref, b_ref, o_ref):
    """f32 output: the output tile itself is the resident accumulator."""
    k = pl.program_id(2)

    @pl.when(k == 0)
    def _():
        # Initialize with the bias; every later K step only accumulates.
        o_ref[...] = jnp.broadcast_to(b_ref[...].astype(jnp.float32), o_ref.shape)

    o_ref[...] += jnp.dot(
        x_ref[...], w_ref[...], preferred_element_type=jnp.float32
    )


def _linear_kernel_acc(x_ref, w_ref, b_ref, o_ref, acc_ref):
    """Narrow output dtype: accumulate in f32 scratch, cast on last K step."""
    k = pl.program_id(2)

    @pl.when(k == 0)
    def _():
        acc_ref[...] = jnp.zeros_like(acc_ref)

    acc_ref[...] += jnp.dot(
        x_ref[...], w_ref[...], preferred_element_type=jnp.float32
    )

    @pl.when(k == pl.num_programs(2) - 1)
    def _():
        o_ref[...] = (acc_ref[...] + b_ref[...].astype(jnp.float32)).astype(
            o_ref.dtype
        )


# ----------------------------------------------------------------------------
# Wrapper
# ----------------------------------------------------------------------------
@functools.partial(
    jax.jit,
    static_argnames=("tm", "tn", "tk", "compute_dtype", "out_dtype", "use_pallas"),
)
def abstract_model_forward(x, w_t, b, *, tm=None, tn=None, tk=None,
                           compute_dtype=None, out_dtype=None, use_pallas=None):
    """y = x @ w_t + b.

    x:   [B, D_in]
    w_t: [D_in, D_out]   (PyTorch Linear weight, pre-transposed)
    b:   [1, D_out]
    Output dtype defaults to x.dtype regardless of compute_dtype.
    """
    B, D_in = x.shape
    D_out = w_t.shape[1]

    cdt = jnp.dtype(compute_dtype) if compute_dtype is not None else jnp.dtype(x.dtype)
    odt = jnp.dtype(out_dtype) if out_dtype is not None else jnp.dtype(x.dtype)

    # --- small-shape fast path (a single XLA fused matmul beats any launch) --
    if use_pallas is None:
        use_pallas = (B * D_in * D_out) >= (1 << 21)
    if not use_pallas:
        y = jnp.dot(x.astype(cdt), w_t.astype(cdt),
                    preferred_element_type=jnp.float32)
        return (y + b.astype(jnp.float32)).astype(odt)

    # --- generation-aware defaults ------------------------------------------
    vmem_phys = _vmem_physical_bytes()
    small_vmem = vmem_phys <= 64 * 1024 * 1024          # v7x per-TC VMEM
    vmem_limit = min((vmem_phys * 3) // 4, 96 * 1024 * 1024)
    in_bytes = cdt.itemsize

    if tm is None:
        tm = 256 if small_vmem else 512
    if tn is None:
        tn = 1024 if (not small_vmem and in_bytes <= 2) else 512
    if tk is None:
        tk = 2048 if in_bytes <= 2 else 1024

    # --- alignment / padding sizes -------------------------------------------
    sub = _sublane(cdt)                                  # dtype-aware sublane
    m0 = _round_up(B, sub)
    k0 = _round_up(D_in, 128)
    n0 = _round_up(D_out, 128)

    tm = min(tm, m0)
    tn = min(tn, n0)
    tk = min(tk, k0)

    # Guarantee >=2 blocks on a parallel axis when possible (v7x megacore).
    if _cdiv(m0, tm) == 1 and _cdiv(n0, tn) == 1:
        if n0 >= 2 * 128:
            tn = _round_up(_cdiv(n0, 2), 128)
        elif m0 >= 2 * sub:
            tm = _round_up(_cdiv(m0, 2), sub)

    M = _round_up(m0, tm)
    K = _round_up(k0, tk)
    N = _round_up(n0, tn)

    # --- cast / pad only when actually required ------------------------------
    x_c = x.astype(cdt) if x.dtype != cdt else x
    w_c = w_t.astype(cdt) if w_t.dtype != cdt else w_t
    if (B, D_in) != (M, K):
        x_c = jnp.pad(x_c, ((0, M - B), (0, K - D_in)))
    if (D_in, D_out) != (K, N):
        w_c = jnp.pad(w_c, ((0, K - D_in), (0, N - D_out)))
    b_c = b if D_out == N else jnp.pad(b, ((0, 0), (0, N - D_out)))

    grid_m, grid_n, grid_k = M // tm, N // tn, K // tk

    # CostEstimate accounts for operand re-reads across the output grid.
    cost = pl.CostEstimate(
        flops=2 * M * N * K,
        transcendentals=0,
        bytes_accessed=(M * K * grid_n + K * N * grid_m + N) * in_bytes
        + M * N * odt.itemsize,
    )

    in_specs = [
        pl.BlockSpec((tm, tk), lambda i, j, k: (i, k)),   # x tile
        pl.BlockSpec((tk, tn), lambda i, j, k: (k, j)),   # w tile
        pl.BlockSpec((1, tn), lambda i, j, k: (0, j)),    # bias tile
    ]
    out_spec = pl.BlockSpec((tm, tn), lambda i, j, k: (i, j))

    if odt == jnp.float32:
        kernel = _linear_kernel_f32out
        scratch = []                                      # output is the accumulator
    else:
        kernel = _linear_kernel_acc
        scratch = [pltpu.VMEM((tm, tn), jnp.float32)]

    y_p = pl.pallas_call(
        kernel,
        out_shape=jax.ShapeDtypeStruct((M, N), odt),
        grid_spec=pltpu.PrefetchScalarGridSpec(
            num_scalar_prefetch=0,
            grid=(grid_m, grid_n, grid_k),                # reduction axis K last
            in_specs=in_specs,
            out_specs=out_spec,
            scratch_shapes=scratch,
        ),
        compiler_params=pltpu.CompilerParams(
            dimension_semantics=("parallel", "parallel", "arbitrary"),
            vmem_limit_bytes=int(vmem_limit),
        ),
        cost_estimate=cost,
    )(x_c, w_c, b_c)

    return y_p[:B, :D_out]


# ----------------------------------------------------------------------------
# Demo / correctness check
# ----------------------------------------------------------------------------
if __name__ == "__main__":
    d_features = 32
    batch = 8

    key = jax.random.PRNGKey(0)
    kx, kw, kb = jax.random.split(key, 3)

    # Deterministic parameter init (PyTorch Linear-style uniform bound).
    bound = 1.0 / jnp.sqrt(jnp.float32(d_features))
    x = jax.random.normal(kx, (batch, d_features), dtype=jnp.float32)
    w = jax.random.uniform(kw, (d_features, d_features), jnp.float32, -bound, bound)
    b = jax.random.uniform(kb, (1, d_features), jnp.float32, -bound, bound)

    y_ref = x @ w + b

    # f32 compute / f32 output (scratch-free accumulate-into-output path).
    y = abstract_model_forward(x, w, b, use_pallas=True)
    y = jax.block_until_ready(y)
    assert y.shape == (batch, d_features)
    assert y.dtype == jnp.float32
    assert jnp.allclose(y, y_ref, atol=1e-5, rtol=1e-5), "f32 mismatch vs reference"

    # bf16 compute, f32 output (f32 MXU accumulation; output dtype decoupled).
    y_bf16c = abstract_model_forward(
        x, w, b, compute_dtype=jnp.bfloat16, use_pallas=True
    )
    y_bf16c = jax.block_until_ready(y_bf16c)
    assert y_bf16c.dtype == jnp.float32
    assert jnp.allclose(y_bf16c, y_ref, atol=5e-2, rtol=5e-2), "bf16 mismatch"

    # Ragged batch (exercises sublane padding + output slice-back).
    x_r = x[:6]
    y_r = abstract_model_forward(x_r, w, b, use_pallas=True)
    y_r = jax.block_until_ready(y_r)
    assert y_r.shape == (6, d_features)
    assert jnp.allclose(y_r, y_ref[:6], atol=1e-5, rtol=1e-5), "ragged mismatch"

    print("KERNEL_OK")
</pallas_src>

<mosaic_0001>
module attributes {stable_mosaic.version = 11 : i64} {
  func.func @_linear_kernel_f32out(%arg0: i32, %arg1: i32, %arg2: i32, %arg3: memref<8x128xf32, #tpu.memory_space<vmem>>, %arg4: memref<128x128xf32, #tpu.memory_space<vmem>>, %arg5: memref<1x128xf32, #tpu.memory_space<vmem>>, %arg6: memref<8x128xf32, #tpu.memory_space<vmem>>) attributes {dimension_semantics = [#tpu.dimension_semantics<parallel>, #tpu.dimension_semantics<parallel>, #tpu.dimension_semantics<arbitrary>], iteration_bounds = array<i64: 1, 1, 1>, scalar_prefetch = 0 : i64, scratch_operands = 0 : i64, tpu.core_type = #tpu.core_type<tc>, window_params = [{transform_indices = @transform_0, window_bounds = array<i64: 8, 128>}, {transform_indices = @transform_1, window_bounds = array<i64: 128, 128>}, {transform_indices = @transform_2, window_bounds = array<i64: 1, 128>}, {transform_indices = @transform_3, window_bounds = array<i64: 8, 128>}]} {
    %c0_i32 = arith.constant 0 : i32
    %0 = arith.cmpi eq, %arg2, %c0_i32 : i32
    %1 = arith.extui %0 : i1 to i32
    %c0_i32_0 = arith.constant 0 : i32
    %2 = arith.cmpi ne, %1, %c0_i32_0 : i32
    scf.if %2 {
      %c0_8 = arith.constant 0 : index
      %c0_9 = arith.constant 0 : index
      %9 = vector.load %arg5[%c0_8, %c0_9] : memref<1x128xf32, #tpu.memory_space<vmem>>, vector<1x128xf32>
      %10 = vector.shape_cast %9 : vector<1x128xf32> to vector<1x128xf32>
      %11 = vector.broadcast %10 : vector<1x128xf32> to vector<8x128xf32>
      %c0_10 = arith.constant 0 : index
      %c0_11 = arith.constant 0 : index
      %12 = vector.load %arg6[%c0_10, %c0_11] : memref<8x128xf32, #tpu.memory_space<vmem>>, vector<8x128xf32>
      tpu.vector_store %arg6[%c0_10, %c0_11], %11 {strides = array<i32>} : memref<8x128xf32, #tpu.memory_space<vmem>>, vector<8x128xf32>,
    } else {
    }
    %c0 = arith.constant 0 : index
    %c0_1 = arith.constant 0 : index
    %3 = vector.load %arg6[%c0, %c0_1] : memref<8x128xf32, #tpu.memory_space<vmem>>, vector<8x128xf32>
    %c0_2 = arith.constant 0 : index
    %c0_3 = arith.constant 0 : index
    %4 = vector.load %arg3[%c0_2, %c0_3] : memref<8x128xf32, #tpu.memory_space<vmem>>, vector<8x128xf32>
    %c0_4 = arith.constant 0 : index
    %c0_5 = arith.constant 0 : index
    %5 = vector.load %arg4[%c0_4, %c0_5] : memref<128x128xf32, #tpu.memory_space<vmem>>, vector<128x128xf32>
    %cst = arith.constant dense<0.000000e+00> : vector<8x128xf32>
    %6 = tpu.matmul %4, %5, %cst {dimension_numbers = #tpu.dot_dimension_numbers<[1], [0], [0], [1], [0, 0, 1, 1], [], []>} : vector<8x128xf32>, vector<128x128xf32>, vector<8x128xf32> -> vector<8x128xf32>
    %7 = arith.addf %3, %6 : vector<8x128xf32>
    %c0_6 = arith.constant 0 : index
    %c0_7 = arith.constant 0 : index
    %8 = vector.load %arg6[%c0_6, %c0_7] : memref<8x128xf32, #tpu.memory_space<vmem>>, vector<8x128xf32>
    tpu.vector_store %arg6[%c0_6, %c0_7], %7 {strides = array<i32>} : memref<8x128xf32, #tpu.memory_space<vmem>>, vector<8x128xf32>,
    return
  }
  func.func @transform_0(%arg0: i32, %arg1: i32, %arg2: i32) -> (i32, i32) {
    %c0_i32 = arith.constant 0 : i32
    return %arg0, %arg2 : i32, i32
  }
  func.func @transform_1(%arg0: i32, %arg1: i32, %arg2: i32) -> (i32, i32) {
    %c0_i32 = arith.constant 0 : i32
    return %arg2, %arg1 : i32, i32
  }
  func.func @transform_2(%arg0: i32, %arg1: i32, %arg2: i32) -> (i32, i32) {
    %c0_i32 = arith.constant 0 : i32
    %c0_i32_0 = arith.constant 0 : i32
    return %c0_i32, %arg1 : i32, i32
  }
  func.func @transform_3(%arg0: i32, %arg1: i32, %arg2: i32) -> (i32, i32) {
    %c0_i32 = arith.constant 0 : i32
    return %arg0, %arg1 : i32, i32
  }
}

</mosaic_0001>

<bundles_post_ra>
// kernel: abstract_model_forward.1
= control target key start
LH: loop header
LB: loop body
LE: loop exit
PB: predicated region body
PF: predicated region fallthrough
CT: control target
= control target key end

     0   :  { %v209_v1 = vmov 0.0   ;;  %vm210_vm0 = vmmov 0   ;;  %s289_s0 = inlined_call_operand.vmem [shape: f32[8,128], index: 0, kind: input, shape index: {}]   ;;  %s290_s1 = inlined_call_operand.vmem [shape: f32[128,128], index: 1, kind: input, shape index: {}]   ;;  %s291_s2 = inlined_call_operand.vmem [shape: f32[1,128], index: 2, kind: input, shape index: {}]   ;;  %s292_s3 = inlined_call_operand.hbm [shape: f32[8,128], index: 3, kind: output, shape index: {}]  }
   0x1   :  { %v44_v0 = vld [vmem:[%s290_s1 + $0x78] sm:$0xff]  ;;  %149 = vmatprep.subr.mxu0 %v209_v1  ;;  %v43_v2 = vld [vmem:[%s290_s1 + $0x70] sm:$0xff]  ;;  %181 = vmatprep.mubr.msk.f32.mxu0 %vm210_vm0, %v209_v1  ;;  %v42_v3 = vld [vmem:[%s290_s1 + $0x68] sm:$0xff] }
   0x2   :  { %150 = vmatpush3.msra.mxu0 %v44_v0  ;;  %v41_v4 = vld [vmem:[%s290_s1 + $0x60] sm:$0xff] }
   0x3   :  { %151 = vmatprep.subr.mxu0 %v209_v1 }
   0x4   :  { %152 = vmatpush3.msra.mxu0 %v43_v2 }
   0x5   :  { %153 = vmatprep.subr.mxu0 %v209_v1 }
   0x6   :  { %154 = vmatpush3.msra.mxu0 %v42_v3 }
   0x7   :  { %8 = vsyncpa [#allocation3], 0  ;;  %155 = vmatprep.subr.mxu0 %v209_v1  ;;  %v40_v5 = vld [vmem:[%s290_s1 + $0x58] sm:$0xff]  ;;  %v39_v6 = vld [vmem:[%s290_s1 + $0x50] sm:$0xff]  ;;  %s211_s21 = smov [#allocation2]  }
   0x8   :  { %156 = vmatpush3.msra.mxu0 %v41_v4  ;;  %v38_v7 = vld [vmem:[%s290_s1 + $0x48] sm:$0xff]  ;;  %v37_v8 = vld [vmem:[%s290_s1 + $0x40] sm:$0xff]  ;;  %v36_v9 = vld [vmem:[%s290_s1 + $0x38] sm:$0xff]  ;;  %s123_s22 = sshll.u32 %s211_s21, 4  ;;  %s124_s22 = int_to_ptr.vmem [resolvable:$true] %s123_s22 }
   0x9   :  { %157 = vmatprep.subr.mxu0 %v209_v1  ;;  %v35_v10 = vld [vmem:[%s290_s1 + $0x30] sm:$0xff]  ;;  %v34_v11 = vld [vmem:[%s290_s1 + $0x28] sm:$0xff]  ;;  %v33_v12 = vld [vmem:[%s290_s1 + $0x20] sm:$0xff]  ;;  %p192_p1 = scmp.lt.s32.totalorder %s124_s22, %s124_s22 }
   0xa   :  { %158 = vmatpush3.msra.mxu0 %v40_v5  ;;  %v32_v13 = vld [vmem:[%s290_s1 + $0x18] sm:$0xff]  ;;  %v31_v14 = vld [vmem:[%s290_s1 + $0x10] sm:$0xff]  ;;  %v30_v15 = vld [vmem:[%s290_s1 + $0x8] sm:$0xff] }
   0xb   :  { %159 = vmatprep.subr.mxu0 %v209_v1  ;;  %v29_v16 = vld [vmem:[%s290_s1] sm:$0xff]  ;;  %s187_s1 = scalar_lea.vmem %s124_s22, 128 }
   0xc   :  { %160 = vmatpush3.msra.mxu0 %v39_v6  ;;  %v28_v17 = vld [vmem:[%s289_s0] sm:$0xff]  ;;  %p188_p0 = scmp.ne.s32.totalorder %s124_s22, %s187_s1  ;;  %p193_p2 = scmp.lt.s32.totalorder %s187_s1, %s187_s1 }
   0xd   :  { %161 = vmatprep.subr.mxu0 %v209_v1  ;;  %v131_v18 = vld [vmem:[%s291_s2] ss:$0 sm:$0xff] }
   0xe   :  { %162 = vmatpush3.msra.mxu0 %v38_v7  ;;  %p194_p3 = por %p193_p2, %p192_p1 }
   0xf   :  { %163 = vmatprep.subr.mxu0 %v209_v1 }
  0x10   :  { %164 = vmatpush3.msra.mxu0 %v37_v8  ;;  %p195_p4 = pnand %p194_p3, %p188_p0 }
  0x11   :  { %165 = vmatprep.subr.mxu0 %v209_v1 }
  0x12   :  { %166 = vmatpush3.msra.mxu0 %v36_v9 }
  0x13   :  { %167 = vmatprep.subr.mxu0 %v209_v1 }
  0x14   :  { %168 = vmatpush3.msra.mxu0 %v35_v10 }
  0x15   :  { %169 = vmatprep.subr.mxu0 %v209_v1 }
  0x16   :  { %170 = vmatpush3.msra.mxu0 %v34_v11 }
  0x17   :  { %171 = vmatprep.subr.mxu0 %v209_v1 }
  0x18   :  { %172 = vmatpush3.msra.mxu0 %v33_v12 }
  0x19   :  { %173 = vmatprep.subr.mxu0 %v209_v1 }
  0x1a   :  { %174 = vmatpush3.msra.mxu0 %v32_v13 }
  0x1b   :  { %175 = vmatprep.subr.mxu0 %v209_v1 }
  0x1c   :  { %176 = vmatpush3.msra.mxu0 %v31_v14 }
  0x1d   :  { %177 = vmatprep.subr.mxu0 %v209_v1 }
  0x1e   :  { %178 = vmatpush3.msra.mxu0 %v30_v15 }
  0x1f   :  { %179 = vmatprep.subr.mxu0 %v209_v1 }
  0x20   :  { %180 = vmatpush3.msra.mxu0 %v29_v16 }
  0x21   :  { %182 = vmatmul.mubr.f32.vlgmr.msra.gmra.mxu0 %v28_v17 }
  0xe1   :  { %v111_v19 = vpop.f32.mrf.mxu0 }
  0xe2   :  { %v115_v20 = vadd.f32 %v131_v18, %v111_v19 }
  0xe3   :  { %v183_v21 = vpop.f32.mrf.mxu0 }
  0xe4   :  { %116 = vst [vmem:[#allocation2] sm:$0xff] %v115_v20 }
  0xe5   :  { %198 = shalt.err (!%p195_p4)
}
  0xe6   :  { %126 = dma.vmem_to_hbm [thread:$0]  %s124_s22, 128, %s292_s3, [#allocation3]  }
  0xe7   :  { %207 = dma.done.wait [#allocation3], 128  }
  0xe8   :  { %208 = vsyncadd [#allocation3], 4294967168 }
  0xe9   :  { %130 = vsyncpa [#allocation3], 1 }

</bundles_post_ra>
